<compile_context>
chip_gen: v7x
topology: tpu7x:2x2x1
jax: 0.10.0
libtpu: 0.0.40
codegen_flags: <defaults>
</compile_context>

<pallas_src>
import jax
import jax.numpy as jnp
from jax.experimental import pallas as pl
from jax.experimental.pallas import tpu as pltpu

IGNORE_INDEX = 255


def _round_up(x, m):
    return (x + m - 1) // m * m


# ----------------------------------------------------------------------------
# Pallas kernel: fused (initial, final) masked cross-entropy.
# Block layout: logits (1, C, TP)  -> classes in sublanes, pixels in lanes
#               labels (1, 1, TP)  -> lane-dense int32
# Outputs are per-lane partial accumulators (1, 1, TP) per core-split row,
# resident in VMEM across the (batch, pixel-tile) reduction axes.
# ----------------------------------------------------------------------------
def _ce_pair_kernel(li_ref, lf_ref, lab_ref, acc_i_ref, acc_f_ref, cnt_ref):
    b = pl.program_id(1)
    p = pl.program_id(2)

    @pl.when((b == 0) & (p == 0))
    def _():
        acc_i_ref[...] = jnp.zeros_like(acc_i_ref)
        acc_f_ref[...] = jnp.zeros_like(acc_f_ref)
        cnt_ref[...] = jnp.zeros_like(cnt_ref)

    lab = lab_ref[0]                                         # (1, TP) int32
    valid = (lab != IGNORE_INDEX).astype(jnp.float32)        # (1, TP)

    def masked_nll(logits_ref):
        lg = logits_ref[0].astype(jnp.float32)               # (C, TP)
        m = jnp.max(lg, axis=0, keepdims=True)               # (1, TP)
        shifted = lg - m
        lse = jnp.log(jnp.sum(jnp.exp(shifted), axis=0, keepdims=True))
        cls = jax.lax.broadcasted_iota(jnp.int32, lg.shape, 0)
        picked = jnp.sum(jnp.where(cls == lab, shifted, 0.0),
                         axis=0, keepdims=True)              # (1, TP)
        return (lse - picked) * valid                        # (1, TP)

    acc_i_ref[...] += masked_nll(li_ref)[None]
    acc_f_ref[...] += masked_nll(lf_ref)[None]
    cnt_ref[...] += valid[None]


def ce_pair_loss(logits_init, logits_final, labels, *, max_tp=8192):
    """Fused F.cross_entropy(ignore_index=255, reduction='mean') for the
    'initial' and 'final' predictions sharing a single label tensor.
    Returns (loss_initial, loss_final)."""
    B, C, H, W = logits_init.shape
    HW = H * W

    # Pixel tile (lanes): big for large images, shrinks for small ones.
    tp = min(max_tp, _round_up(pl.cdiv(HW, 2), 128))
    hwp = _round_up(HW, 2 * tp)        # multiple of 2*tp so the core-split divides
    nth = hwp // (2 * tp)

    li = logits_init.reshape(B, C, HW)      # no-copy NCHW-native reshape
    lf = logits_final.reshape(B, C, HW)
    lab = labels.reshape(B, 1, HW).astype(jnp.int32)
    if hwp != HW:
        pad = hwp - HW
        li = jnp.pad(li, ((0, 0), (0, 0), (0, pad)))
        lf = jnp.pad(lf, ((0, 0), (0, 0), (0, pad)))
        lab = jnp.pad(lab, ((0, 0), (0, 0), (0, pad)),
                      constant_values=IGNORE_INDEX)

    part_i, part_f, part_c = pl.pallas_call(
        _ce_pair_kernel,
        out_shape=(
            jax.ShapeDtypeStruct((2, 1, tp), jnp.float32),   # partial nll, initial
            jax.ShapeDtypeStruct((2, 1, tp), jnp.float32),   # partial nll, final
            jax.ShapeDtypeStruct((2, 1, tp), jnp.float32),   # partial valid count
        ),
        grid_spec=pltpu.PrefetchScalarGridSpec(
            num_scalar_prefetch=0,
            grid=(2, B, nth),
            in_specs=[
                pl.BlockSpec((1, C, tp), lambda s, b, p: (b, 0, s * nth + p)),
                pl.BlockSpec((1, C, tp), lambda s, b, p: (b, 0, s * nth + p)),
                pl.BlockSpec((1, 1, tp), lambda s, b, p: (b, 0, s * nth + p)),
            ],
            out_specs=[
                pl.BlockSpec((1, 1, tp), lambda s, b, p: (s, 0, 0)),
                pl.BlockSpec((1, 1, tp), lambda s, b, p: (s, 0, 0)),
                pl.BlockSpec((1, 1, tp), lambda s, b, p: (s, 0, 0)),
            ],
        ),
        compiler_params=pltpu.CompilerParams(
            dimension_semantics=("parallel", "arbitrary", "arbitrary")),
    )(li, lf, lab)

    cnt = jnp.sum(part_c)
    # If every label is ignore_index, PyTorch returns NaN; we return 0 (documented).
    denom = jnp.maximum(cnt, 1.0)
    return jnp.sum(part_i) / denom, jnp.sum(part_f) / denom


# ----------------------------------------------------------------------------
# Pallas kernel: fused (initial, final) mean L1 loss.
# Inputs flattened to lane-dense (rows, LANE) tiles; per-block dense |diff|
# accumulated into VMEM-resident (1, TR, LANE) output accumulators.
# ----------------------------------------------------------------------------
def _l1_pair_kernel(pi_ref, pf_ref, g_ref, acc_i_ref, acc_f_ref):
    p = pl.program_id(1)

    @pl.when(p == 0)
    def _():
        acc_i_ref[...] = jnp.zeros_like(acc_i_ref)
        acc_f_ref[...] = jnp.zeros_like(acc_f_ref)

    g = g_ref[...].astype(jnp.float32)                       # (TR, LANE)
    acc_i_ref[...] += jnp.abs(pi_ref[...].astype(jnp.float32) - g)[None]
    acc_f_ref[...] += jnp.abs(pf_ref[...].astype(jnp.float32) - g)[None]


def l1_pair_loss(pred_init, pred_final, gt, *, lane=1024, max_rows=128):
    """Fused F.l1_loss(reduction='mean') for the 'initial' and 'final'
    predictions sharing one ground-truth tensor.
    Returns (loss_initial, loss_final)."""
    n = int(pred_init.size)
    pi = pred_init.reshape(-1)
    pf = pred_final.reshape(-1)
    g = gt.reshape(-1)

    rows = pl.cdiv(n, lane)
    tr = min(max_rows, _round_up(pl.cdiv(rows, 2), 8))
    rows_p = _round_up(rows, 2 * tr)       # multiple of 2*tr for the core split
    total_p = rows_p * lane
    if total_p != n:
        pad = total_p - n                   # zero padding -> |0-0| contributes 0
        pi = jnp.pad(pi, (0, pad))
        pf = jnp.pad(pf, (0, pad))
        g = jnp.pad(g, (0, pad))
    pi = pi.reshape(rows_p, lane)
    pf = pf.reshape(rows_p, lane)
    g = g.reshape(rows_p, lane)
    nbh = rows_p // (2 * tr)

    part_i, part_f = pl.pallas_call(
        _l1_pair_kernel,
        out_shape=(
            jax.ShapeDtypeStruct((2, tr, lane), jnp.float32),
            jax.ShapeDtypeStruct((2, tr, lane), jnp.float32),
        ),
        grid_spec=pltpu.PrefetchScalarGridSpec(
            num_scalar_prefetch=0,
            grid=(2, nbh),
            in_specs=[
                pl.BlockSpec((tr, lane), lambda s, p: (s * nbh + p, 0)),
                pl.BlockSpec((tr, lane), lambda s, p: (s * nbh + p, 0)),
                pl.BlockSpec((tr, lane), lambda s, p: (s * nbh + p, 0)),
            ],
            out_specs=[
                pl.BlockSpec((1, tr, lane), lambda s, p: (s, 0, 0)),
                pl.BlockSpec((1, tr, lane), lambda s, p: (s, 0, 0)),
            ],
        ),
        compiler_params=pltpu.CompilerParams(
            dimension_semantics=("parallel", "arbitrary")),
    )(pi, pf, g)

    denom = jnp.float32(n)
    return jnp.sum(part_i) / denom, jnp.sum(part_f) / denom


# Un-fused fallbacks (used only for tasks that are not in both task lists).
def cross_entropy_loss(logits_nchw, labels_bhw):
    return ce_pair_loss(logits_nchw, logits_nchw, labels_bhw)[0]


def l1_loss(pred_nchw, gt_nchw):
    return l1_pair_loss(pred_nchw, pred_nchw, gt_nchw)[0]


# ----------------------------------------------------------------------------
# CTALLoss scheme (dict plumbing + scalar weighting — plain JAX glue)
# ----------------------------------------------------------------------------
class CTALLoss:
    """Pallas port of the CTAL multi-task loss scheme.

    `losses` follows the PyTorch layout {'initial': {task: fn}, 'final': {task: fn}}.
    When a task appears in both `auxilary_tasks` and `tasks` and a fused loss is
    provided in `paired_losses` ({task: fn(pred_init, pred_final, gt) ->
    (loss_init, loss_final)}), both stages are computed with a single
    pallas_call; otherwise the original per-stage path is used. Output structure
    (losses dict with 'initial'/'final'/'total', preds dict) matches PyTorch.
    """

    def __init__(self, tasks, auxilary_tasks, losses, loss_weighting,
                 paired_losses=None):
        self.tasks = tasks
        self.auxilary_tasks = auxilary_tasks
        self.losses = losses
        self.loss_weighting = loss_weighting
        self.paired_losses = paired_losses or {}

    def __call__(self, pred, gt):
        preds = {'initial': {}, 'final': {}}
        losses = {'initial': {}, 'final': {}}
        fused = set()
        for task, paired_fn in self.paired_losses.items():
            if task in self.auxilary_tasks and task in self.tasks:
                p_init, p_final = pred[f'initial_{task}'], pred[task]
                l_init, l_final = paired_fn(p_init, p_final, gt[task])
                preds['initial'][task] = p_init
                preds['final'][task] = p_final
                losses['initial'][task] = l_init
                losses['final'][task] = l_final
                fused.add(task)
        for task in self.auxilary_tasks:
            if task in fused:
                continue
            pred_, gt_ = pred[f'initial_{task}'], gt[task]
            losses['initial'][task] = self.losses['initial'][task](pred_, gt_)
            preds['initial'][task] = pred_
        for task in self.tasks:
            if task in fused:
                continue
            pred_, gt_ = pred[task], gt[task]
            losses['final'][task] = self.losses['final'][task](pred_, gt_)
            preds['final'][task] = pred_
        losses['total'] = self.loss_weighting(losses)
        return losses, preds


def make_fixed_loss_weighting(weights):
    # weights: {'initial': {task: w}, 'final': {task: w}} — deterministic init.
    def weighting(losses):
        total = jnp.float32(0.0)
        for stage in ('initial', 'final'):
            for task, w in weights[stage].items():
                total = total + jnp.float32(w) * losses[stage][task]
        return total
    return weighting


if __name__ == "__main__":
    key = jax.random.PRNGKey(0)
    B, C, H, W = 2, 8, 16, 16          # semseg: 8 classes
    k1, k2, k3, k4, k5, k6 = jax.random.split(key, 6)

    pred = {
        'initial_semseg': jax.random.normal(k1, (B, C, H, W), jnp.float32),
        'initial_depth':  jax.random.normal(k2, (B, 1, H, W), jnp.float32),
        'semseg':         jax.random.normal(k3, (B, C, H, W), jnp.float32),
        'depth':          jax.random.normal(k4, (B, 1, H, W), jnp.float32),
    }
    labels = jax.random.randint(k5, (B, H, W), 0, C).astype(jnp.int32)
    # sprinkle some ignore_index pixels to exercise the valid-mask path
    ignore_mask = jax.random.bernoulli(k6, 0.1, (B, H, W))
    labels = jnp.where(ignore_mask, IGNORE_INDEX, labels)
    gt = {
        'semseg': labels,
        'depth': jax.random.normal(jax.random.PRNGKey(7), (B, 1, H, W),
                                   jnp.float32),
    }

    tasks = ['semseg', 'depth']
    auxilary_tasks = ['semseg', 'depth']
    losses_fns = {
        'initial': {'semseg': cross_entropy_loss, 'depth': l1_loss},
        'final':   {'semseg': cross_entropy_loss, 'depth': l1_loss},
    }
    paired = {'semseg': ce_pair_loss, 'depth': l1_pair_loss}
    loss_weighting = make_fixed_loss_weighting(
        {'initial': {'semseg': 1.0, 'depth': 1.0},
         'final':   {'semseg': 1.0, 'depth': 1.0}})

    loss_scheme = CTALLoss(tasks, auxilary_tasks, losses_fns, loss_weighting,
                           paired_losses=paired)
    losses, preds = loss_scheme(pred, gt)
    jax.block_until_ready(losses['total'])

    # quiet sanity check against a pure-JAX reference
    def ref_ce(logits, lab):
        lp = jax.nn.log_softmax(jnp.transpose(logits, (0, 2, 3, 1)), axis=-1)
        valid = (lab != IGNORE_INDEX)
        safe = jnp.where(valid, lab, 0)
        nll = -jnp.take_along_axis(lp, safe[..., None], axis=-1)[..., 0]
        return jnp.sum(nll * valid) / jnp.maximum(jnp.sum(valid), 1)

    ref_total = (ref_ce(pred['initial_semseg'], gt['semseg'])
                 + ref_ce(pred['semseg'], gt['semseg'])
                 + jnp.mean(jnp.abs(pred['initial_depth'] - gt['depth']))
                 + jnp.mean(jnp.abs(pred['depth'] - gt['depth'])))
    assert jnp.allclose(losses['total'], ref_total, rtol=1e-4, atol=1e-5), \
        (losses['total'], ref_total)

    print("KERNEL_OK")
</pallas_src>

<mosaic_0001>
module attributes {stable_mosaic.version = 11 : i64} {
  func.func @_ce_pair_kernel(%arg0: i32, %arg1: i32, %arg2: i32, %arg3: memref<1x8x128xf32, #tpu.memory_space<vmem>>, %arg4: memref<1x8x128xf32, #tpu.memory_space<vmem>>, %arg5: memref<1x1x128xi32, #tpu.memory_space<vmem>>, %arg6: memref<1x1x128xf32, #tpu.memory_space<vmem>>, %arg7: memref<1x1x128xf32, #tpu.memory_space<vmem>>, %arg8: memref<1x1x128xf32, #tpu.memory_space<vmem>>) attributes {dimension_semantics = [#tpu.dimension_semantics<parallel>, #tpu.dimension_semantics<arbitrary>, #tpu.dimension_semantics<arbitrary>], iteration_bounds = array<i64: 2, 2, 1>, scalar_prefetch = 0 : i64, scratch_operands = 0 : i64, tpu.core_type = #tpu.core_type<tc>, window_params = [{transform_indices = @transform_0, window_bounds = array<i64: 1, 8, 128>}, {transform_indices = @transform_1, window_bounds = array<i64: 1, 8, 128>}, {transform_indices = @transform_2, window_bounds = array<i64: 1, 1, 128>}, {transform_indices = @transform_3, window_bounds = array<i64: 1, 1, 128>}, {transform_indices = @transform_4, window_bounds = array<i64: 1, 1, 128>}, {transform_indices = @transform_5, window_bounds = array<i64: 1, 1, 128>}]} {
    %c0_i32 = arith.constant 0 : i32
    %0 = arith.cmpi eq, %arg1, %c0_i32 : i32
    %c0_i32_0 = arith.constant 0 : i32
    %1 = arith.cmpi eq, %arg2, %c0_i32_0 : i32
    %2 = arith.andi %0, %1 : i1
    %3 = arith.extui %2 : i1 to i32
    %c0_i32_1 = arith.constant 0 : i32
    %4 = arith.cmpi ne, %3, %c0_i32_1 : i32
    scf.if %4 {
      %cst_35 = arith.constant 0.000000e+00 : f32
      %61 = vector.broadcast %cst_35 : f32 to vector<1x1x128xf32>
      %c0_36 = arith.constant 0 : index
      %c0_37 = arith.constant 0 : index
      %c0_38 = arith.constant 0 : index
      %62 = vector.load %arg6[%c0_36, %c0_37, %c0_38] : memref<1x1x128xf32, #tpu.memory_space<vmem>>, vector<1x1x128xf32>
      tpu.vector_store %arg6[%c0_36, %c0_37, %c0_38], %61 {strides = array<i32>} : memref<1x1x128xf32, #tpu.memory_space<vmem>>, vector<1x1x128xf32>,
      %cst_39 = arith.constant 0.000000e+00 : f32
      %63 = vector.broadcast %cst_39 : f32 to vector<1x1x128xf32>
      %c0_40 = arith.constant 0 : index
      %c0_41 = arith.constant 0 : index
      %c0_42 = arith.constant 0 : index
      %64 = vector.load %arg7[%c0_40, %c0_41, %c0_42] : memref<1x1x128xf32, #tpu.memory_space<vmem>>, vector<1x1x128xf32>
      tpu.vector_store %arg7[%c0_40, %c0_41, %c0_42], %63 {strides = array<i32>} : memref<1x1x128xf32, #tpu.memory_space<vmem>>, vector<1x1x128xf32>,
      %cst_43 = arith.constant 0.000000e+00 : f32
      %65 = vector.broadcast %cst_43 : f32 to vector<1x1x128xf32>
      %c0_44 = arith.constant 0 : index
      %c0_45 = arith.constant 0 : index
      %c0_46 = arith.constant 0 : index
      %66 = vector.load %arg8[%c0_44, %c0_45, %c0_46] : memref<1x1x128xf32, #tpu.memory_space<vmem>>, vector<1x1x128xf32>
      tpu.vector_store %arg8[%c0_44, %c0_45, %c0_46], %65 {strides = array<i32>} : memref<1x1x128xf32, #tpu.memory_space<vmem>>, vector<1x1x128xf32>,
    } else {
    }
    %c0 = arith.constant 0 : index
    %c0_2 = arith.constant 0 : index
    %c0_3 = arith.constant 0 : index
    %5 = vector.load %arg5[%c0, %c0_2, %c0_3] : memref<1x1x128xi32, #tpu.memory_space<vmem>>, vector<1x1x128xi32>
    %6 = vector.shape_cast %5 : vector<1x1x128xi32> to vector<1x128xi32>
    %c255_i32 = arith.constant 255 : i32
    %7 = vector.broadcast %c255_i32 : i32 to vector<1x128xi32>
    %8 = arith.cmpi ne, %6, %7 : vector<1x128xi32>
    %9 = arith.extui %8 : vector<1x128xi1> to vector<1x128xi32>
    %10 = arith.sitofp %9 : vector<1x128xi32> to vector<1x128xf32>
    %c0_4 = arith.constant 0 : index
    %c0_5 = arith.constant 0 : index
    %c0_6 = arith.constant 0 : index
    %11 = vector.load %arg6[%c0_4, %c0_5, %c0_6] : memref<1x1x128xf32, #tpu.memory_space<vmem>>, vector<1x1x128xf32>
    %c0_7 = arith.constant 0 : index
    %c0_8 = arith.constant 0 : index
    %c0_9 = arith.constant 0 : index
    %12 = vector.load %arg3[%c0_7, %c0_8, %c0_9] : memref<1x8x128xf32, #tpu.memory_space<vmem>>, vector<1x8x128xf32>
    %13 = vector.shape_cast %12 : vector<1x8x128xf32> to vector<8x128xf32>
    %cst = arith.constant dense<0xFF800000> : vector<128xf32>
    %14 = vector.multi_reduction <maximumf>, %13, %cst [0] : vector<8x128xf32> to vector<128xf32>
    %15 = vector.shape_cast %14 : vector<128xf32> to vector<1x128xf32>
    %16 = vector.broadcast %15 : vector<1x128xf32> to vector<8x128xf32>
    %17 = arith.subf %13, %16 : vector<8x128xf32>
    %18 = math.exp %17 : vector<8x128xf32>
    %cst_10 = arith.constant dense<0.000000e+00> : vector<128xf32>
    %19 = vector.multi_reduction <add>, %18, %cst_10 [0] : vector<8x128xf32> to vector<128xf32>
    %20 = vector.shape_cast %19 : vector<128xf32> to vector<1x128xf32>
    %21 = math.log %20 : vector<1x128xf32>
    %22 = tpu.iota {dimensions = array<i32: 0>} : vector<8x128xi32>
    %23 = vector.broadcast %6 : vector<1x128xi32> to vector<8x128xi32>
    %24 = arith.cmpi eq, %22, %23 : vector<8x128xi32>
    %cst_11 = arith.constant 0.000000e+00 : f32
    %25 = vector.broadcast %cst_11 : f32 to vector<8x128xf32>
    %26 = arith.select %24, %17, %25 : vector<8x128xi1>, vector<8x128xf32>
    %cst_12 = arith.constant dense<0.000000e+00> : vector<128xf32>
    %27 = vector.multi_reduction <add>, %26, %cst_12 [0] : vector<8x128xf32> to vector<128xf32>
    %28 = vector.shape_cast %27 : vector<128xf32> to vector<1x128xf32>
    %29 = arith.subf %21, %28 : vector<1x128xf32>
    %30 = arith.mulf %29, %10 : vector<1x128xf32>
    %31 = vector.shape_cast %30 : vector<1x128xf32> to vector<1x1x128xf32>
    %32 = arith.addf %11, %31 : vector<1x1x128xf32>
    %c0_13 = arith.constant 0 : index
    %c0_14 = arith.constant 0 : index
    %c0_15 = arith.constant 0 : index
    %33 = vector.load %arg6[%c0_13, %c0_14, %c0_15] : memref<1x1x128xf32, #tpu.memory_space<vmem>>, vector<1x1x128xf32>
    tpu.vector_store %arg6[%c0_13, %c0_14, %c0_15], %32 {strides = array<i32>} : memref<1x1x128xf32, #tpu.memory_space<vmem>>, vector<1x1x128xf32>,
    %c0_16 = arith.constant 0 : index
    %c0_17 = arith.constant 0 : index
    %c0_18 = arith.constant 0 : index
    %34 = vector.load %arg7[%c0_16, %c0_17, %c0_18] : memref<1x1x128xf32, #tpu.memory_space<vmem>>, vector<1x1x128xf32>
    %c0_19 = arith.constant 0 : index
    %c0_20 = arith.constant 0 : index
    %c0_21 = arith.constant 0 : index
    %35 = vector.load %arg4[%c0_19, %c0_20, %c0_21] : memref<1x8x128xf32, #tpu.memory_space<vmem>>, vector<1x8x128xf32>
    %36 = vector.shape_cast %35 : vector<1x8x128xf32> to vector<8x128xf32>
    %cst_22 = arith.constant dense<0xFF800000> : vector<128xf32>
    %37 = vector.multi_reduction <maximumf>, %36, %cst_22 [0] : vector<8x128xf32> to vector<128xf32>
    %38 = vector.shape_cast %37 : vector<128xf32> to vector<1x128xf32>
    %39 = vector.broadcast %38 : vector<1x128xf32> to vector<8x128xf32>
    %40 = arith.subf %36, %39 : vector<8x128xf32>
    %41 = math.exp %40 : vector<8x128xf32>
    %cst_23 = arith.constant dense<0.000000e+00> : vector<128xf32>
    %42 = vector.multi_reduction <add>, %41, %cst_23 [0] : vector<8x128xf32> to vector<128xf32>
    %43 = vector.shape_cast %42 : vector<128xf32> to vector<1x128xf32>
    %44 = math.log %43 : vector<1x128xf32>
    %45 = tpu.iota {dimensions = array<i32: 0>} : vector<8x128xi32>
    %46 = vector.broadcast %6 : vector<1x128xi32> to vector<8x128xi32>
    %47 = arith.cmpi eq, %45, %46 : vector<8x128xi32>
    %cst_24 = arith.constant 0.000000e+00 : f32
    %48 = vector.broadcast %cst_24 : f32 to vector<8x128xf32>
    %49 = arith.select %47, %40, %48 : vector<8x128xi1>, vector<8x128xf32>
    %cst_25 = arith.constant dense<0.000000e+00> : vector<128xf32>
    %50 = vector.multi_reduction <add>, %49, %cst_25 [0] : vector<8x128xf32> to vector<128xf32>
    %51 = vector.shape_cast %50 : vector<128xf32> to vector<1x128xf32>
    %52 = arith.subf %44, %51 : vector<1x128xf32>
    %53 = arith.mulf %52, %10 : vector<1x128xf32>
    %54 = vector.shape_cast %53 : vector<1x128xf32> to vector<1x1x128xf32>
    %55 = arith.addf %34, %54 : vector<1x1x128xf32>
    %c0_26 = arith.constant 0 : index
    %c0_27 = arith.constant 0 : index
    %c0_28 = arith.constant 0 : index
    %56 = vector.load %arg7[%c0_26, %c0_27, %c0_28] : memref<1x1x128xf32, #tpu.memory_space<vmem>>, vector<1x1x128xf32>
    tpu.vector_store %arg7[%c0_26, %c0_27, %c0_28], %55 {strides = array<i32>} : memref<1x1x128xf32, #tpu.memory_space<vmem>>, vector<1x1x128xf32>,
    %c0_29 = arith.constant 0 : index
    %c0_30 = arith.constant 0 : index
    %c0_31 = arith.constant 0 : index
    %57 = vector.load %arg8[%c0_29, %c0_30, %c0_31] : memref<1x1x128xf32, #tpu.memory_space<vmem>>, vector<1x1x128xf32>
    %58 = vector.shape_cast %10 : vector<1x128xf32> to vector<1x1x128xf32>
    %59 = arith.addf %57, %58 : vector<1x1x128xf32>
    %c0_32 = arith.constant 0 : index
    %c0_33 = arith.constant 0 : index
    %c0_34 = arith.constant 0 : index
    %60 = vector.load %arg8[%c0_32, %c0_33, %c0_34] : memref<1x1x128xf32, #tpu.memory_space<vmem>>, vector<1x1x128xf32>
    tpu.vector_store %arg8[%c0_32, %c0_33, %c0_34], %59 {strides = array<i32>} : memref<1x1x128xf32, #tpu.memory_space<vmem>>, vector<1x1x128xf32>,
    return
  }
  func.func @transform_0(%arg0: i32, %arg1: i32, %arg2: i32) -> (i32, i32, i32) {
    %c1_i32 = arith.constant 1 : i32
    %0 = arith.muli %arg0, %c1_i32 : i32
    %1 = arith.addi %0, %arg2 : i32
    %c0_i32 = arith.constant 0 : i32
    %c0_i32_0 = arith.constant 0 : i32
    return %arg1, %c0_i32, %1 : i32, i32, i32
  }
  func.func @transform_1(%arg0: i32, %arg1: i32, %arg2: i32) -> (i32, i32, i32) {
    %c1_i32 = arith.constant 1 : i32
    %0 = arith.muli %arg0, %c1_i32 : i32
    %1 = arith.addi %0, %arg2 : i32
    %c0_i32 = arith.constant 0 : i32
    %c0_i32_0 = arith.constant 0 : i32
    return %arg1, %c0_i32, %1 : i32, i32, i32
  }
  func.func @transform_2(%arg0: i32, %arg1: i32, %arg2: i32) -> (i32, i32, i32) {
    %c1_i32 = arith.constant 1 : i32
    %0 = arith.muli %arg0, %c1_i32 : i32
    %1 = arith.addi %0, %arg2 : i32
    %c0_i32 = arith.constant 0 : i32
    %c0_i32_0 = arith.constant 0 : i32
    return %arg1, %c0_i32, %1 : i32, i32, i32
  }
  func.func @transform_3(%arg0: i32, %arg1: i32, %arg2: i32) -> (i32, i32, i32) {
    %c0_i32 = arith.constant 0 : i32
    %c0_i32_0 = arith.constant 0 : i32
    %c0_i32_1 = arith.constant 0 : i32
    return %arg0, %c0_i32, %c0_i32_0 : i32, i32, i32
  }
  func.func @transform_4(%arg0: i32, %arg1: i32, %arg2: i32) -> (i32, i32, i32) {
    %c0_i32 = arith.constant 0 : i32
    %c0_i32_0 = arith.constant 0 : i32
    %c0_i32_1 = arith.constant 0 : i32
    return %arg0, %c0_i32, %c0_i32_0 : i32, i32, i32
  }
  func.func @transform_5(%arg0: i32, %arg1: i32, %arg2: i32) -> (i32, i32, i32) {
    %c0_i32 = arith.constant 0 : i32
    %c0_i32_0 = arith.constant 0 : i32
    %c0_i32_1 = arith.constant 0 : i32
    return %arg0, %c0_i32, %c0_i32_0 : i32, i32, i32
  }
}

</mosaic_0001>

<bundles_post_ra>
// kernel: tpu_custom_call.1
= control target key start
LH: loop header
LB: loop body
LE: loop exit
PB: predicated region body
PF: predicated region fallthrough
CT: control target
= control target key end

     0   :  { %s1479_s0 = inlined_call_operand.hbm [shape: f32[2,8,256], index: 0, kind: input, shape index: {}]   ;;  %s1480_s1 = inlined_call_operand.hbm [shape: f32[2,8,256], index: 1, kind: input, shape index: {}]   ;;  %s1481_s2 = inlined_call_operand.vmem [shape: s32[2,1,256], index: 2, kind: input, shape index: {}]   ;;  %s1482_s3 = inlined_call_operand.hbm [shape: f32[2,1,128], index: 3, kind: output, shape index: {0}]   ;;  %s1483_s4 = inlined_call_operand.hbm [shape: f32[2,1,128], index: 4, kind: output, shape index: {1}]   ;;  %s1484_s5 = inlined_call_operand.hbm [shape: f32[2,1,128], index: 5, kind: output, shape index: {2}]  }
   0x1   :  { %1495 = sst [smem:[#allocation21_spill]] %s1479_s0 }
   0x2   :  { %11 = vsyncpa [#allocation3], 0 }
   0x3   :  { %13 = vsyncpa [#allocation3 + $0x1], 0 }
   0x4   :  { %14 = vsyncpa [#allocation6], 0 }
   0x5   :  { %16 = vsyncpa [#allocation6 + $0x1], 0 }
   0x6   :  { %17 = vsyncpa [#allocation4], 0 }
   0x7   :  { %19 = vsyncpa [#allocation4 + $0x1], 0 }
   0x8   :  { %20 = vsyncpa [#allocation9], 0 }
   0x9   :  { %22 = vsyncpa [#allocation9 + $0x1], 0  ;;  %s1103_s18 = smov 0   ;;  %s1105_s19 = smov 0  }
   0xa   :  { %s1107_s20 = smov 0   ;;  %s1109_s21 = smov 0  }
   0xb   :  { %s1111_s22 = smov 0   ;;  %s1113_s23 = smov 0  }
   0xc   :  { %s1115_s24 = smov 0   ;;  %s1117_s25 = smov 0  }
   0xd   :  { %s1119_s26 = smov 0   ;;  %s1121_s27 = smov 0  }
   0xe   :  { %s1123_s28 = smov 0  }
   0xf LB: > { %1496 = sst [smem:[#allocation15_spill]] %s1044_s23  ;;  %s1157_s29 = sadd.s32 4294967295, %s1064_s28   ;;  %s1064_s28 = sphi %s1123_s28, %s28_s28   ;;  %s1060_s27 = sphi %s1121_s27, %s1524_s27   ;;  %s1056_s26 = sphi %s1119_s26, %s1523_s26   ;;  %s1052_s25 = sphi %s1117_s25, %s1522_s25   ;;  %s1048_s24 = sphi %s1115_s24, %s1521_s24   ;;  %s1044_s23 = sphi %s1113_s23, %s1520_s23   ;;  %s1040_s22 = sphi %s1111_s22, %s1529_s22   ;;  %s1036_s21 = sphi %s1109_s21, %s1528_s21   ;;  %s1032_s20 = sphi %s1107_s20, %s1527_s20   ;;  %s1028_s19 = sphi %s1105_s19, %s1526_s19   ;;  %s1024_s18 = sphi %s1103_s18, %s1525_s18  }
  0x10   : > { %1497 = sst [smem:[#allocation16_spill]] %s1056_s26  ;;  %s1486_s30 = sadd.s32 4294967294, %s1064_s28  }
  0x11   : > { %1498 = sst [smem:[#allocation17_spill]] %s1060_s27  ;;  %s43_s6 = sadd.s32 1, %s1056_s26 }
  0x12   : > { %s47_s7 = sadd.s32 1, %s1060_s27  ;;  %p45_p0 = scmp.ge.s32.totalorder %s43_s6, 2 }
  0x13   : > { %s58_s8 = sadd.s32 1, %s1044_s23  ;;  %p65_p1 = scmp.ne.s32.totalorder %s1044_s23, %s1040_s22 }
  0x14   : > { %p66_p2 = scmp.eq.s32.totalorder %s1064_s28, 0  ;;  %s1531_s6 = smov (%p45_p0, %s43_s6), 0 }
  0x15   : > { %1499 = sst [smem:[#allocation18_spill]] %s1531_s6  ;;  %s1533_s7 = smov (!%p45_p0, %s47_s7), %s1060_s27 }
  0x16   : > { %s53_s9 = ssub.s32 %s1056_s26, %s1531_s6  ;;  %p1171_p3 = por %p66_p2, %p65_p1 }
  0x17   : > { %p49_p4 = scmp.ge.s32.totalorder %s1533_s7, 2  ;;  %p71_p5 = scmp.ne.s32.totalorder %s1040_s22, %s1036_s21 }
  0x18   : > { %p72_p6 = scmp.eq.s32.totalorder %s1157_s29, 0  ;;  %s144_s11 = sadd.s32 1, %s1032_s20 }
  0x19   : > { %s1535_s7 = smov (%p49_p4, %s1533_s7), 0  ;;  %p154_p8 = scmp.ne.s32.totalorder %s1032_s20, %s1028_s19 }
  0x1a   : > { %1501 = sst [smem:[#allocation19_spill]] %s1535_s7  ;;  %p1180_p7 = por %p72_p6, %p71_p5 }
  0x1b   : > { %s54_s13 = ssub.s32 %s1060_s27, %s1535_s7  ;;  %p155_p9 = scmp.eq.s32.totalorder %s1157_s29, 3 }
  0x1c   : > { %s1502_s12 = scalar_select %p1180_p7, 1, 0 }
  0x1d   : > { %s55_s14 = sor.u32 %s54_s13, %s53_s9  ;;  %p142_p10 = scmp.eq.s32.totalorder %s54_s13, 0 }
  0x1e   : > { %p56_p11 = scmp.eq.s32.totalorder %s55_s14, 0  ;;  %p1189_p12 = por %p155_p9, %p154_p8 }
  0x1f   : > { %s1194_s16 = scalar_select %p142_p10, %s1032_s20, %s144_s11  }
  0x20   : > { %s1503_s15 = scalar_select %p1189_p12, 1, 0 }
  0x21   : > { %s1197_s17 = scalar_select %p56_p11, %s1044_s23, %s58_s8  }
  0x22   : > { %p160_p13 = scmp.ne.s32.totalorder %s1028_s19, %s1024_s18  ;;  %p161_p0 = scmp.eq.s32.totalorder %s1486_s30, 3 }
  0x23   : > { %1504 = sst [smem:[#allocation20_spill]] %s1197_s17  ;;  %p718_p1 = scmp.lt.s32.totalorder %s1064_s28, 4 }
  0x24   : > { %p1204_p2 = por %p161_p0, %p160_p13  ;;  %s1209_s9 = sand.u32 1, %s1044_s23  }
  0x25   : > { %s1489_s13 = sshll.u32 %s1209_s9, 3  ;;  %s674_s11 = sshll.u32 %s1056_s26, 1 }
  0x26   : > { %s1505_s21 = scalar_select %p1204_p2, 1, 0 }
  0x27   : > { %s1214_s14 = sadd.s32 %s1060_s27, %s674_s11  ;;  %s237_s8 = scalar_lea.vmem [#allocation2], %s1489_s13 }
  0x28   : > { %s247_s7 = sshll.u32 %s237_s8, 4  ;;  %s1490_s30 = sshll.u32 %s1214_s14, 7  ;;  %s1219_s7 = int_to_ptr.vmem [resolvable:$true] %s247_s7 }
  0x29   : > { %s1506_s0 = sld [smem:[#allocation21_spill]]  ;;  %p1230_p4 = pnand %p718_p1, %p1171_p3 }
  0x2a   : > { %s234_s8 = scalar_lea.sflag [#allocation3], %s1209_s9 }
  0x2b   : > { %p820_p9 = pneg %p1230_p4 }
  0x2f   : > { %s1226_s23 = scalar_lea.hbm %s1506_s0, %s1490_s30  ;;  %s823_s17 = scalar_lea.hbm %s1506_s0, 512 }
  0x30   : > { %s818_s13 = scalar_lea.hbm %s1226_s23, 128  ;;  %p824_p3 = scmp.lt.u32.totalorder %s1226_s23, %s1506_s0 }
  0x31   : > { %p819_p8 = scmp.ne.s32.totalorder %s1226_s23, %s818_s13  ;;  %p825_p13 = scmp.lt.u32.totalorder %s823_s17, %s818_s13 }
  0x32   : > { %p827_p1 = scmp.lt.u32.totalorder %s818_s13, %s1226_s23 }
  0x33   : > { %p821_p10 = pnand %p820_p9, %p819_p8  ;;  %p826_p0 = por %p825_p13, %p824_p3 }
  0x35   : > { %p822_p11 = pneg %p821_p10  ;;  %p828_p5 = por %p827_p1, %p826_p0 }
  0x37   : > { %p829_p6 = pnand %p828_p5, %p822_p11 }
  0x39   : > { %832 = shalt.err (!%p829_p6)
}
  0x3a   : > { %s833_s26 = scalar_lea.vmem %s1219_s7, 128  ;;  %s1066_s6 = smov [#allocation2]  }
  0x3b   : > { %p834_p8 = scmp.ne.s32.totalorder %s1219_s7, %s833_s26  ;;  %s838_s10 = sshll.u32 %s1066_s6, 4  ;;  %s839_s10 = int_to_ptr.vmem [resolvable:$false] %s838_s10 }
  0x3c   : > { %s840_s27 = scalar_lea.vmem %s839_s10, 256  ;;  %p841_p12 = scmp.lt.s32.totalorder %s1219_s7, %s839_s10 }
  0x3d   : > { %p836_p10 = pnand %p834_p8, %p820_p9  ;;  %p842_p3 = scmp.lt.s32.totalorder %s840_s27, %s833_s26 }
  0x3f   : > { %p837_p2 = pneg %p836_p10  ;;  %p843_p13 = por %p842_p3, %p841_p12 }
  0x41   : > { %p844_p0 = pnand %p843_p13, %p837_p2 }
  0x43   : > { %847 = shalt.err (!%p844_p0)
}
  0x44   : > { %704 = dma.hbm_to_vmem [thread:$0]  (!%p1230_p4), %s1226_s23, 128, %s1219_s7, %s234_s8  }
  0x45   : > { %p1508_p5 = scmp.lt.s32.totalorder %s1064_s28, 5  ;;  %p1509_p6 = scmp.ge.s32.totalorder %s1064_s28, 1 }
  0x46   : > { %s1511_s26 = sshll.u32 %s1214_s14, 7  ;;  %s1512_s10 = sshll.u32 %s1209_s9, 3 }
  0x47   : > { %p1266_p11 = pnand %p1509_p6, %p1508_p5  ;;  %s1275_s6 = scalar_lea.hbm %s1480_s1, %s1511_s26 }
  0x48   : > { %s258_s27 = scalar_lea.vmem [#allocation5], %s1512_s10  ;;  %s255_s23 = scalar_lea.sflag [#allocation6], %s1209_s9 }
  0x49   : > { %s1510_s30 = scalar_select %p1266_p11, 1, 0 }
  0x4a   : > { %s268_s0 = sshll.u32 %s258_s27, 4  ;;  %s848_s7 = scalar_lea.hbm %s1275_s6, 128  ;;  %s269_s0 = int_to_ptr.vmem [resolvable:$true] %s268_s0 }
  0x4b   : > { %p849_p12 = scmp.ne.s32.totalorder %s1275_s6, %s848_s7  ;;  %s853_s26 = scalar_lea.hbm %s1480_s1, 512 }
  0x4c   : > { %p854_p8 = scmp.lt.u32.totalorder %s1275_s6, %s1480_s1  ;;  %p855_p10 = scmp.lt.u32.totalorder %s853_s26, %s848_s7 }
  0x4d   : > { %p851_p2 = pnand %p849_p12, %p820_p9  ;;  %p857_p13 = scmp.lt.u32.totalorder %s848_s7, %s1275_s6 }
  0x4e   : > { %p856_p3 = por %p855_p10, %p854_p8 }
  0x4f   : > { %p852_p1 = pneg %p851_p2 }
  0x50   : > { %p858_p0 = por %p857_p13, %p856_p3 }
  0x52   : > { %p859_p5 = pnand %p858_p0, %p852_p1 }
  0x54   : > { %862 = shalt.err (!%p859_p5)
}
  0x55   : > { %s863_s9 = scalar_lea.vmem %s269_s0, 128  ;;  %s1067_s10 = smov [#allocation5]  }
  0x56   : > { %p864_p6 = scmp.ne.s32.totalorder %s269_s0, %s863_s9  ;;  %s868_s27 = sshll.u32 %s1067_s10, 4  ;;  %s869_s27 = int_to_ptr.vmem [resolvable:$false] %s868_s27 }
  0x57   : > { %s870_s14 = scalar_lea.vmem %s869_s27, 256  ;;  %p871_p7 = scmp.lt.s32.totalorder %s269_s0, %s869_s27 }
  0x58   : > { %p866_p12 = pnand %p864_p6, %p820_p9  ;;  %p872_p11 = scmp.lt.s32.totalorder %s870_s14, %s863_s9 }
  0x5a   : > { %p867_p2 = pneg %p866_p12  ;;  %p873_p8 = por %p872_p11, %p871_p7 }
  0x5c   : > { %p874_p10 = pnand %p873_p8, %p867_p2 }
  0x5e   : > { %877 = shalt.err (!%p874_p10)
}
  0x5f   : > { %707 = dma.hbm_to_vmem [thread:$0]  (!%p1230_p4), %s1275_s6, 128, %s269_s0, %s255_s23  }
  0x60   : > { %p1513_p1 = scmp.ne.s32.totalorder %s1510_s30, 0 }
  0x61   : > { %s291_s7 = sand.u32 (!%p1513_p1), 1, %s1040_s22   ;;  %p1514_p9 = scmp.ne.s32.totalorder (!%p1513_p1), %s1502_s12, 0 }
  0x62   : > { %289 = sbr.rel (%p1513_p1) target bundleno = 243 (0xf3), region = 32  ;;  %s680_s8 = sshll.u32 (!%p1513_p1), %s291_s7, 3 }
  0x63   : > { %s292_s26 = scalar_lea.sflag (!%p1513_p1), [#allocation3], %s291_s7  ;;  %s295_s13 = scalar_lea.vmem (!%p1513_p1), [#allocation2], %s680_s8 }
  0x69   : > { %1007 = dma.done.wait (%p1514_p9), %s292_s26, 128  }
  0x6a   : > { %1009 = vsyncadd (%p1514_p9), %s292_s26, 4294967168  ;;  %s301_s17 = scalar_lea.sflag [#allocation6], %s291_s7  ;;  %s304_s9 = scalar_lea.vmem [#allocation5], %s680_s8 }
  0x6b   : > { %1011 = dma.done.wait (%p1514_p9), %s301_s17, 128  }
  0x6c   : > { %1013 = vsyncadd (%p1514_p9), %s301_s17, 4294967168  ;;  %s1311_s0 = sand.u32 1, %s1028_s19   ;;  %p354_p7 = scmp.lt.s32.totalorder %s1048_s24, 1 }
  0x6d   : > { %p356_p4 = scmp.lt.s32.totalorder %s1052_s25, 1  ;;  %p362_p11 = scmp.eq.s32.totalorder %s1048_s24, 0 }
  0x6e   : > { %s355_s11 = scalar_select %p354_p7, %s1048_s24, 1 }
  0x6f   : > { %s357_s30 = scalar_select %p356_p4, %s1052_s25, 1 }
  0x70   : > { %s682_s6 = sshll.u32 %s355_s11, 1  ;;  %s1322_s14 = scalar_lea.vmem [#allocation7], %s1311_s0  ;;  %v1068_v0 = vmov (%p362_p11), 0.0  }
  0x71   : > { %s359_s23 = sadd.s32 %s682_s6, %s357_s30  ;;  %s1325_s7 = scalar_lea.vmem [#allocation8], %s1311_s0  ;;  %368 = vst [vmem:[%s1322_s14] sm:$0x1] (%p362_p11), %v1068_v0 }
  0x72   : > { %s360_s27 = scalar_lea.vmem %s1481_s2, %s359_s23  ;;  %s1328_s8 = scalar_lea.vmem [#allocation10], %s1311_s0  ;;  %369 = vst [vmem:[%s1325_s7] sm:$0x1] (%p362_p11), %v1068_v0 }
  0x73   : > { %367 = sbr.rel (!%p362_p11) target bundleno = 122 (0x7a), region = 44  ;;  %370 = vst [vmem:[%s1328_s8] sm:$0x1] (%p362_p11), %v1068_v0 }
  0x7a PF: > { %v371_v1 = vld [vmem:[%s360_s27] sm:$0x1]  ;;  %v413_v4 = vld [vmem:[%s304_s9] sm:$0xff]  ;;  %v1069_v5 = vmov 0.0   ;;  %v394_v15 = vlaneseq  ;;  %s685_s26 = sshll.u32 %s1052_s25, 4  ;;  %s479_s17 = sshll.u32 %s1325_s7, 4  ;;  %s1359_s17 = int_to_ptr.vmem [resolvable:$true] %s479_s17 }
  0x7b   : > { %v376_v2 = vld [vmem:[%s295_s13] sm:$0xff]  ;;  %vm372_vm0 = vcmp.ne.s32.totalorder %v371_v1, 255  ;;  %v414_v7 = vrot.slane %v413_v4, 4  ;;  %s466_s13 = sshll.u32 %s1322_s14, 4  ;;  %s492_s9 = sshll.u32 %s1328_s8, 4  ;;  %s1352_s13 = int_to_ptr.vmem [resolvable:$true] %s466_s13  ;;  %s1367_s9 = int_to_ptr.vmem [resolvable:$true] %s492_s9 }
  0x7c   : > { %v377_v3 = vrot.slane %v376_v2, 4  ;;  %v1333_v6 = vsel %vm372_vm0, 1.0, %v1069_v5  ;;  %v442_v8 = vld [vmem:[%s1328_s8] sm:$0x1]  ;;  %v395_v20 = vshrl.u32 %v394_v15, 7  ;;  %s1350_s6 = scalar_lea.hbm %s1482_s3, %s685_s26  ;;  %s1357_s12 = scalar_lea.hbm %s1483_s4, %s685_s26 }
  0x7d   : > { %v443_v10 = vadd.f32 %v1333_v6, %v442_v8  ;;  %v415_v11 = vmax.f32 %v413_v4, %v414_v7  ;;  %v375_v62 = vld [vmem:[%s1322_s14] sm:$0x1]  ;;  %s446_s11 = scalar_lea.sflag [#allocation4], %s1311_s0  ;;  %s878_s30 = scalar_lea.vmem %s1352_s13, 16 }
  0x7e   : > { %v378_v9 = vmax.f32 %v376_v2, %v377_v3  ;;  %v398_v25 = vsub.s32 0, %v395_v20  ;;  %v412_v63 = vld [vmem:[%s1325_s7] sm:$0x1]  ;;  %p879_p3 = scmp.ne.s32.totalorder %s1352_s13, %s878_s30  ;;  %p1515_p13 = scmp.ne.s32.totalorder %s1503_s15, 0 }
  0x7f   : > { %444 = vst [vmem:[%s1328_s8] sm:$0x1] %v443_v10  ;;  %v416_v13 = vrot.slane %v415_v11, 2  ;;  %s1365_s8 = scalar_lea.hbm %s1484_s5, %s685_s26  ;;  %s1070_s25 = smov [#allocation7]  }
  0x80   : > { %v379_v12 = vrot.slane %v378_v9, 2  ;;  %v399_v27 = vrot.slane %v371_v1, %v398_v25  ;;  %p880_p0 = pnand %p879_p3, %p1515_p13  ;;  %s882_s23 = sshll.u32 %s1070_s25, 4  ;;  %s883_s23 = int_to_ptr.vmem [resolvable:$false] %s882_s23 }
  0x81   : > { %v417_v16 = vmax.f32 %v415_v11, %v416_v13  ;;  %s884_s24 = scalar_lea.vmem %s883_s23, 32  ;;  %p885_p6 = scmp.lt.s32.totalorder %s1352_s13, %s883_s23 }
  0x82   : > { %v380_v14 = vmax.f32 %v378_v9, %v379_v12  ;;  %vm400_vm1 = vcmp.eq.s32.totalorder %v395_v20, %v399_v27  ;;  %p881_p5 = pneg %p880_p0  ;;  %p886_p12 = scmp.lt.s32.totalorder %s884_s24, %s878_s30 }
  0x83   : > { %v418_v18 = vrot.slane %v417_v16, 1 }
  0x84   : > { %v381_v17 = vrot.slane %v380_v14, 1  ;;  %p887_p2 = por %p886_p12, %p885_p6 }
  0x85   : > { %v419_v21 = vmax.f32 %v417_v16, %v418_v18 }
  0x86   : > { %v382_v19 = vmax.f32 %v380_v14, %v381_v17  ;;  %p888_p8 = pnand %p887_p2, %p881_p5 }
  0x87   : > { %v420_v23 = vsub.f32 %v413_v4, %v419_v21 }
  0x88   : > { %v383_v22 = vsub.f32 %v376_v2, %v382_v19 }
  0x89   : > { %v421_v26 = vmul.f32 1.442695, %v420_v23  ;;  %v431_v30 = vsel %vm400_vm1, %v420_v23, 0.0 }
  0x8a   : > { %v384_v24 = vmul.f32 1.442695, %v383_v22  ;;  %v401_v28 = vsel %vm400_vm1, %v383_v22, 0.0  ;;  %v432_v35 = vrot.slane %v431_v30, 4 }
  0x8b   : > { %v402_v33 = vrot.slane %v401_v28, 4 }
  0x8c   : > { %810 = vpow2.f32 %v384_v24  ;;  %v433_v41 = vadd.f32 %v432_v35, %v431_v30 }
  0x8d   : > { %812 = vpow2.f32 %v421_v26  ;;  %v403_v40 = vadd.f32 %v402_v33, %v401_v28 }
  0x8e   : > { %v434_v47 = vrot.slane %v433_v41, 2 }
  0x8f   : > { %v404_v46 = vrot.slane %v403_v40, 2 }
  0x90   : > { %v435_v51 = vadd.f32 %v434_v47, %v433_v41 }
  0x91   : > { %v405_v50 = vadd.f32 %v404_v46, %v403_v40 }
  0x92   : > { %v436_v53 = vrot.slane %v435_v51, 1 }
  0x93   : > { %v406_v52 = vrot.slane %v405_v50, 1 }
  0x94   : > { %v437_v56 = vadd.f32 %v436_v53, %v435_v51 }
  0x95   : > { %v407_v54 = vadd.f32 %v406_v52, %v405_v50 }
  0x96   : > { %v811_v29 = vpop.eup %810 }
  0x97   : > { %v813_v31 = vpop.eup %812  ;;  %v386_v32 = vrot.slane %v811_v29, 4 }
  0x98   : > { %v423_v34 = vrot.slane %v813_v31, 4 }
  0x99   : > { %v387_v36 = vadd.f32 %v811_v29, %v386_v32 }
  0x9a   : > { %v424_v37 = vadd.f32 %v813_v31, %v423_v34 }
  0x9b   : > { %v388_v38 = vrot.slane %v387_v36, 2 }
  0x9c   : > { %v425_v39 = vrot.slane %v424_v37, 2 }
  0x9d   : > { %v389_v42 = vadd.f32 %v388_v38, %v387_v36 }
  0x9e   : > { %v426_v43 = vadd.f32 %v425_v39, %v424_v37 }
  0x9f   : > { %v390_v44 = vrot.slane %v389_v42, 1 }
  0xa0   : > { %v427_v45 = vrot.slane %v426_v43, 1 }
  0xa1   : > { %v391_v48 = vadd.f32 %v390_v44, %v389_v42 }
  0xa2   : > { %v428_v49 = vadd.f32 %v427_v45, %v426_v43 }
  0xa3   : > { %814 = vlog2.f32 %v391_v48 }
  0xa4   : > { %816 = vlog2.f32 %v428_v49 }
  0xad   : > { %v815_v55 = vpop.eup %814 }
  0xae   : > { %v817_v57 = vpop.eup %816  ;;  %v393_v58 = vmul.f32 0.6931472, %v815_v55 }
  0xaf   : > { %v430_v59 = vmul.f32 0.6931472, %v817_v57 }
  0xb0   : > { %v408_v60 = vsub.f32 %v393_v58, %v407_v54 }
  0xb1   : > { %v438_v61 = vsub.f32 %v430_v59, %v437_v56 }
  0xb2   : > { %v409_v0 = vmul.f32 %v1333_v6, %v408_v60 }
  0xb3   : > { %v439_v1 = vmul.f32 %v1333_v6, %v438_v61 }
  0xb4   : > { %v410_v2 = vadd.f32 %v409_v0, %v375_v62 }
  0xb5   : > { %v440_v3 = vadd.f32 %v439_v1, %v412_v63 }
  0xb6   : > { %411 = vst [vmem:[%s1322_s14] sm:$0x1] %v410_v2 }
  0xb7   : > { %441 = vst [vmem:[%s1325_s7] sm:$0x1] %v440_v3 }
  0xb8   : > { %891 = shalt.err (!%p888_p8)
}
  0xb9   : > { %s892_s0 = scalar_lea.hbm %s1350_s6, 16  ;;  %s896_s26 = scalar_lea.hbm %s1482_s3, 32 }
  0xba   : > { %p893_p10 = scmp.ne.s32.totalorder %s1350_s6, %s892_s0  ;;  %p897_p7 = scmp.lt.u32.totalorder %s1350_s6, %s1482_s3 }
  0xbb   : > { %p898_p4 = scmp.lt.u32.totalorder %s896_s26, %s892_s0  ;;  %p900_p3 = scmp.lt.u32.totalorder %s892_s0, %s1350_s6 }
  0xbc   : > { %p894_p1 = pnand %p893_p10, %p1515_p13 }
  0xbd   : > { %p899_p11 = por %p898_p4, %p897_p7 }
  0xbe   : > { %p895_p9 = pneg %p894_p1 }
  0xbf   : > { %p901_p0 = por %p900_p3, %p899_p11 }
  0xc1   : > { %p902_p5 = pnand %p901_p0, %p895_p9 }
  0xc3   : > { %905 = shalt.err (!%p902_p5)
}
  0xc4   : > { %695 = dma.vmem_to_hbm [thread:$0]  (%p1515_p13), %s1352_s13, 16, %s1350_s6, %s446_s11  }
  0xc5   : > { %s1516_s24 = sand.u32 1, %s1157_s29   ;;  %s906_s25 = scalar_lea.vmem %s1359_s17, 16 }
  0xc6   : > { %s1394_s30 = scalar_lea.sflag [#allocation9], %s1516_s24  ;;  %p907_p6 = scmp.ne.s32.totalorder %s1359_s17, %s906_s25 }
  0xc7   : > { %s1071_s23 = smov [#allocation8]  }
  0xc8   : > { %p908_p12 = pnand %p907_p6, %p1515_p13  ;;  %s910_s0 = sshll.u32 %s1071_s23, 4  ;;  %s911_s0 = int_to_ptr.vmem [resolvable:$false] %s910_s0 }
  0xc9   : > { %s912_s14 = scalar_lea.vmem %s911_s0, 32  ;;  %p913_p8 = scmp.lt.s32.totalorder %s1359_s17, %s911_s0 }
  0xca   : > { %p909_p2 = pneg %p908_p12  ;;  %p914_p10 = scmp.lt.s32.totalorder %s912_s14, %s906_s25 }
  0xcc   : > { %p915_p1 = por %p914_p10, %p913_p8 }
  0xce   : > { %p916_p9 = pnand %p915_p1, %p909_p2 }
  0xd0   : > { %919 = shalt.err (!%p916_p9)
}
  0xd1   : > { %s920_s29 = scalar_lea.hbm %s1357_s12, 16  ;;  %s924_s11 = scalar_lea.hbm %s1483_s4, 32 }
  0xd2   : > { %p921_p7 = scmp.ne.s32.totalorder %s1357_s12, %s920_s29  ;;  %p925_p3 = scmp.lt.u32.totalorder %s1357_s12, %s1483_s4 }
  0xd3   : > { %p926_p0 = scmp.lt.u32.totalorder %s924_s11, %s920_s29  ;;  %p928_p6 = scmp.lt.u32.totalorder %s920_s29, %s1357_s12 }
  0xd4   : > { %p922_p4 = pnand %p921_p7, %p1515_p13 }
  0xd5   : > { %p927_p5 = por %p926_p0, %p925_p3 }
  0xd6   : > { %p923_p11 = pneg %p922_p4 }
  0xd7   : > { %p929_p12 = por %p928_p6, %p927_p5 }
  0xd9   : > { %p930_p2 = pnand %p929_p12, %p923_p11 }
  0xdb   : > { %933 = shalt.err (!%p930_p2)
}
  0xdc   : > { %696 = dma.vmem_to_hbm [thread:$0]  (%p1515_p13), %s1359_s17, 16, %s1357_s12, %s1394_s30  }
  0xdd   : > { %s934_s10 = scalar_lea.vmem %s1367_s9, 16  ;;  %s1072_s27 = smov [#allocation10]  }
  0xde   : > { %p935_p8 = scmp.ne.s32.totalorder %s1367_s9, %s934_s10  ;;  %s938_s24 = sshll.u32 %s1072_s27, 4  ;;  %s939_s24 = int_to_ptr.vmem [resolvable:$false] %s938_s24 }
  0xdf   : > { %s940_s25 = scalar_lea.vmem %s939_s24, 32  ;;  %p941_p9 = scmp.lt.s32.totalorder %s1367_s9, %s939_s24 }
  0xe0   : > { %p936_p10 = pnand %p935_p8, %p1515_p13  ;;  %p942_p7 = scmp.lt.s32.totalorder %s940_s25, %s934_s10 }
  0xe2   : > { %p937_p1 = pneg %p936_p10  ;;  %p943_p4 = por %p942_p7, %p941_p9 }
  0xe4   : > { %p944_p11 = pnand %p943_p4, %p937_p1 }
  0xe6   : > { %947 = shalt.err (!%p944_p11)
}
  0xe7   : > { %s948_s17 = scalar_lea.hbm %s1365_s8, 16  ;;  %s952_s0 = scalar_lea.hbm %s1484_s5, 32 }
  0xe8   : > { %p949_p3 = scmp.ne.s32.totalorder %s1365_s8, %s948_s17  ;;  %p953_p6 = scmp.lt.u32.totalorder %s1365_s8, %s1484_s5 }
  0xe9   : > { %p954_p12 = scmp.lt.u32.totalorder %s952_s0, %s948_s17  ;;  %p956_p8 = scmp.lt.u32.totalorder %s948_s17, %s1365_s8 }
  0xea   : > { %p950_p0 = pnand %p949_p3, %p1515_p13 }
  0xeb   : > { %p955_p2 = por %p954_p12, %p953_p6 }
  0xec   : > { %p951_p5 = pneg %p950_p0 }
  0xed   : > { %p957_p10 = por %p956_p8, %p955_p2 }
  0xef   : > { %p958_p1 = pnand %p957_p10, %p951_p5 }
  0xf1   : > { %961 = shalt.err (!%p958_p1)
}
  0xf2   : > { %697 = dma.vmem_to_hbm [thread:$0]  (%p1515_p13), %s1367_s9, 16, %s1365_s8, %s1394_s30  }
  0xf3 PF: > { %p719_p9 = scmp.ge.s32.totalorder %s1064_s28, 2  ;;  %s504_s13 = sand.u32 1, %s1024_s18  }
  0xf4   : > { %p1517_p7 = scmp.ne.s32.totalorder %s1505_s21, 0  ;;  %s505_s6 = scalar_lea.sflag [#allocation4], %s504_s13 }
  0xf6   : > { %p709_p4 = pnand %p719_p9, %p1517_p7 }
  0xf8   : > { %1015 = dma.done.wait (!%p709_p4), %s505_s6, 16  }
  0xf9   : > { %1017 = vsyncadd (!%p709_p4), %s505_s6, 4294967280  ;;  %s1518_s11 = sadd.s32 4294967294, %s1064_s28  }
  0xfa   : > { %s512_s7 = sand.u32 1, %s1518_s11  }
  0xfb   : > { %s513_s26 = scalar_lea.sflag [#allocation9], %s512_s7 }
  0xfc   : > { %1019 = dma.done.wait (!%p709_p4), %s513_s26, 32  }
  0xfd   : > { %1021 = vsyncadd (!%p709_p4), %s513_s26, 4294967264  ;;  %s28_s28 = sadd.s32 1, %s1064_s28   ;;  %s1519_s15 = sld [smem:[#allocation15_spill]] }
  0xfe   : > { %p25_p13 = scmp.ge.s32.totalorder %s28_s28, 6   ;;  %s1520_s23 = sld [smem:[#allocation20_spill]] }
  0xff   : > { %s1521_s24 = sld [smem:[#allocation16_spill]]  ;;  %s1522_s25 = sld [smem:[#allocation17_spill]] }
 0x100   : > { %s1523_s26 = sld [smem:[#allocation18_spill]]  ;;  %s1524_s27 = sld [smem:[#allocation19_spill]] }
 0x101   : > { %s1525_s18 = smov %s1028_s19  ;;  %s1526_s19 = smov %s1032_s20 }
 0x102   : > { %s1527_s20 = smov %s1194_s16  ;;  %s1528_s21 = smov %s1040_s22 }
 0x103   : > { %s1529_s22 = smov %s1519_s15  ;;  %27 = sbr.rel (!%p25_p13) target bundleno = 15 (0xf), region = 129 }
 0x10a   :  { %525 = vsyncpa [#allocation3], 1 }
 0x10b   :  { %527 = vsyncpa [#allocation3 + $0x1], 1 }
 0x10c   :  { %528 = vsyncpa [#allocation6], 1 }
 0x10d   :  { %530 = vsyncpa [#allocation6 + $0x1], 1 }
 0x10e   :  { %531 = vsyncpa [#allocation4], 1 }
 0x10f   :  { %533 = vsyncpa [#allocation4 + $0x1], 1 }
 0x110   :  { %534 = vsyncpa [#allocation9], 1 }
 0x111   :  { %536 = vsyncpa [#allocation9 + $0x1], 1 }

</bundles_post_ra>
